<compile_context>
chip_gen: v6e
topology: v6e:2x2x1
jax: 0.10.0
libtpu: 0.0.40
codegen_flags: <defaults>
</compile_context>

<pallas_src>
import jax
import jax.numpy as jnp
from jax import lax
from jax.experimental import pallas as pl
from jax.experimental.pallas import tpu as pltpu

EPS = 1e-12  # matches torch.nn.functional.normalize default eps


def embed_to_latents_kernel(x_ref, w_ref, o_ref):
    # x_ref: (tb, dim) ; w_ref: (n_pad, dim) [PyTorch Linear layout] ; o_ref: (tb, n_pad)
    # MXU matmul, native operand dtypes, f32 accumulation; contract both last dims.
    latents = lax.dot_general(
        x_ref[...], w_ref[...],
        dimension_numbers=(((1,), (1,)), ((), ())),
        preferred_element_type=jnp.float32,
    )  # (tb, n_pad) f32

    # L2 normalize along last dim, all math in f32; rsqrt goes to the EUP slot.
    sumsq = jnp.sum(latents * latents, axis=-1, keepdims=True)
    inv_norm = lax.rsqrt(jnp.maximum(sumsq, EPS * EPS))
    o_ref[...] = (latents * inv_norm).astype(o_ref.dtype)


def _pick_batch_tile(B, dim, n_out, dtype_bytes, vmem_budget=24 << 20):
    """Largest batch tile (multiple of 8, capped at 1024) fitting a conservative
    VMEM budget: double-buffered x block + out block + resident (double-buffered)
    weight + f32 latents intermediate.  24 MiB sits under the scoped default on
    v5e/v6e and leaves ample headroom on v7x's 64 MiB VMEM."""
    w_bytes = 2 * n_out * dim * dtype_bytes
    per_row = 2 * (dim + n_out) * dtype_bytes + 4 * n_out
    budget = max(vmem_budget - w_bytes, 1 << 20)
    tb = min(budget // per_row, 1024, B)
    if tb >= B:
        return B
    return max(8, (tb // 8) * 8)


def embed_to_latents(x, w):
    """x: [..., dim] ; w: [dim_latents, dim] (PyTorch Linear layout).
    Returns [..., dim_latents], L2-normalized along the last dim."""
    n_out, dim = w.shape
    lead_shape = x.shape[:-1]
    assert x.shape[-1] == dim
    x2 = x.reshape(-1, dim)
    B = x2.shape[0]

    # Lane-dense output: pad latent dim to a multiple of 128 with zero weight rows.
    # TODO(synk): in production, pre-pad the weight once at parameter setup instead of per call.
    n_pad = n_out if n_out % 128 == 0 else ((n_out + 127) // 128) * 128
    if n_pad != n_out:
        w = jnp.pad(w, ((0, n_pad - n_out), (0, 0)))

    dtype_bytes = jnp.dtype(x.dtype).itemsize
    tb = _pick_batch_tile(B, dim, n_pad, dtype_bytes)
    grid = (pl.cdiv(B, tb),)

    out = pl.pallas_call(
        embed_to_latents_kernel,
        out_shape=jax.ShapeDtypeStruct((B, n_pad), x.dtype),
        grid_spec=pltpu.PrefetchScalarGridSpec(
            num_scalar_prefetch=0,
            grid=grid,
            in_specs=[
                pl.BlockSpec((tb, dim), lambda i: (i, 0)),       # x: tiled over batch
                pl.BlockSpec((n_pad, dim), lambda i: (0, 0)),    # weight: resident across grid
            ],
            out_specs=pl.BlockSpec((tb, n_pad), lambda i: (i, 0)),
        ),
        compiler_params=pltpu.CompilerParams(
            dimension_semantics=("parallel",),
        ),
        cost_estimate=pl.CostEstimate(
            flops=2 * B * dim * n_pad,
            transcendentals=B,
            bytes_accessed=(B * dim + n_pad * dim + B * n_pad) * dtype_bytes,
        ),
    )(x2, w)

    if n_pad != n_out:
        out = out[:, :n_out]
    return out.reshape(*lead_shape, n_out)


if __name__ == "__main__":
    # Small, deterministic setup consistent with the module: dim=32, dim_latents=64, batch=8.
    key = jax.random.PRNGKey(0)
    k_x, k_w = jax.random.split(key)

    batch, dim, dim_latents = 8, 32, 64
    x = jax.random.normal(k_x, (batch, dim), dtype=jnp.float32)
    # nn.Linear default init: U(-1/sqrt(dim), 1/sqrt(dim)), shape [dim_latents, dim]
    bound = 1.0 / (dim ** 0.5)
    w = jax.random.uniform(k_w, (dim_latents, dim), dtype=jnp.float32,
                           minval=-bound, maxval=bound)

    out = embed_to_latents(x, w)
    out = jax.block_until_ready(out)

    # Reference in plain JAX (highest-precision matmul so the f32 check is meaningful).
    ref_lat = jnp.einsum("bd,nd->bn", x, w, precision=lax.Precision.HIGHEST)
    ref = ref_lat / jnp.maximum(
        jnp.sqrt(jnp.sum(ref_lat * ref_lat, axis=-1, keepdims=True)), EPS)

    assert out.shape == (batch, dim_latents)
    assert jnp.allclose(out, ref, atol=2e-5, rtol=2e-5)

    print("KERNEL_OK")
</pallas_src>

<mosaic_0001>
module attributes {stable_mosaic.version = 11 : i64} {
  func.func @embed_to_latents_kernel(%arg0: i32, %arg1: memref<8x32xf32, #tpu.memory_space<vmem>>, %arg2: memref<128x32xf32, #tpu.memory_space<vmem>>, %arg3: memref<8x128xf32, #tpu.memory_space<vmem>>) attributes {dimension_semantics = [#tpu.dimension_semantics<parallel>], iteration_bounds = array<i64: 1>, scalar_prefetch = 0 : i64, scratch_operands = 0 : i64, tpu.core_type = #tpu.core_type<tc>, window_params = [{transform_indices = @transform_0, window_bounds = array<i64: 8, 32>}, {pipeline_mode = #tpu.pipeline_mode<synchronous>, transform_indices = @transform_1, window_bounds = array<i64: 128, 32>}, {transform_indices = @transform_2, window_bounds = array<i64: 8, 128>}]} {
    %c0 = arith.constant 0 : index
    %c0_0 = arith.constant 0 : index
    %0 = vector.load %arg1[%c0, %c0_0] : memref<8x32xf32, #tpu.memory_space<vmem>>, vector<8x32xf32>
    %c0_1 = arith.constant 0 : index
    %c0_2 = arith.constant 0 : index
    %1 = vector.load %arg2[%c0_1, %c0_2] : memref<128x32xf32, #tpu.memory_space<vmem>>, vector<128x32xf32>
    %cst = arith.constant dense<0.000000e+00> : vector<8x128xf32>
    %2 = tpu.matmul %0, %1, %cst {dimension_numbers = #tpu.dot_dimension_numbers<[1], [1], [0], [0], [0, 0, 1, 0], [], []>} : vector<8x32xf32>, vector<128x32xf32>, vector<8x128xf32> -> vector<8x128xf32>
    %3 = arith.mulf %2, %2 : vector<8x128xf32>
    %cst_3 = arith.constant dense<0.000000e+00> : vector<8xf32>
    %4 = vector.multi_reduction <add>, %3, %cst_3 [1] : vector<8x128xf32> to vector<8xf32>
    %5 = vector.shape_cast %4 : vector<8xf32> to vector<8x1xf32>
    %cst_4 = arith.constant 1.000000e-24 : f32
    %6 = vector.broadcast %cst_4 : f32 to vector<8x1xf32>
    %7 = arith.maximumf %5, %6 : vector<8x1xf32>
    %8 = math.rsqrt %7 : vector<8x1xf32>
    %9 = vector.broadcast %8 : vector<8x1xf32> to vector<8x128xf32>
    %10 = arith.mulf %2, %9 : vector<8x128xf32>
    %c0_5 = arith.constant 0 : index
    %c0_6 = arith.constant 0 : index
    %11 = vector.load %arg3[%c0_5, %c0_6] : memref<8x128xf32, #tpu.memory_space<vmem>>, vector<8x128xf32>
    tpu.vector_store %arg3[%c0_5, %c0_6], %10 {strides = array<i32>} : memref<8x128xf32, #tpu.memory_space<vmem>>, vector<8x128xf32>,
    return
  }
  func.func @transform_0(%arg0: i32) -> (i32, i32) {
    %c0_i32 = arith.constant 0 : i32
    %c0_i32_0 = arith.constant 0 : i32
    return %arg0, %c0_i32 : i32, i32
  }
  func.func @transform_1(%arg0: i32) -> (i32, i32) {
    %c0_i32 = arith.constant 0 : i32
    %c0_i32_0 = arith.constant 0 : i32
    %c0_i32_1 = arith.constant 0 : i32
    return %c0_i32, %c0_i32_0 : i32, i32
  }
  func.func @transform_2(%arg0: i32) -> (i32, i32) {
    %c0_i32 = arith.constant 0 : i32
    %c0_i32_0 = arith.constant 0 : i32
    return %arg0, %c0_i32 : i32, i32
  }
}

</mosaic_0001>

<bundles_post_ra>
// kernel: tpu_custom_call.1
= control target key start
LH: loop header
LB: loop body
LE: loop exit
PB: predicated region body
PF: predicated region fallthrough
CT: control target
= control target key end

     0   :  { %vm29_vm0 = vcmask 261120   ;;  %v268_v1 = vmov 0.0   ;;  %vm269_vm1 = vmmov 0   ;;  %s357_s0 = inlined_call_operand.vmem [shape: f32[8,32], index: 0, kind: input, shape index: {}]   ;;  %s358_s1 = inlined_call_operand.vmem [shape: f32[128,32], index: 1, kind: input, shape index: {}]   ;;  %s359_s2 = inlined_call_operand.hbm [shape: f32[8,128], index: 2, kind: output, shape index: {}]  }
   0x1   :  { %v28_v0 = vld [vmem:[%s358_s1 + $0x78] sm:$0xff]  ;;  %206 = vmatprep.subr.mxu0 %v268_v1  ;;  %238 = vmatprep.mubr.msk.f32.mxu0 %vm269_vm1, %v268_v1  ;;  %v27_v2 = vld [vmem:[%s358_s1 + $0x70] sm:$0xff] }
   0x2   :  { %207 = vmatpush3.xpose.msk.msra.mxu0 %vm29_vm0, %v28_v0 }
   0x3   :  { %208 = vmatprep.subr.mxu0 %v268_v1 }
   0x4   :  { %7 = vsyncpa [#allocation3], 0  ;;  %v26_v3 = vld [vmem:[%s358_s1 + $0x68] sm:$0xff]  ;;  %v25_v4 = vld [vmem:[%s358_s1 + $0x60] sm:$0xff]  ;;  %s270_s15 = smov [#allocation2]  }
   0x5   :  { %v24_v5 = vld [vmem:[%s358_s1 + $0x58] sm:$0xff]  ;;  %v23_v6 = vld [vmem:[%s358_s1 + $0x50] sm:$0xff]  ;;  %v22_v7 = vld [vmem:[%s358_s1 + $0x48] sm:$0xff]  ;;  %s164_s16 = sshll.u32 %s270_s15, 4  ;;  %s165_s16 = int_to_ptr.vmem [resolvable:$true] %s164_s16 }
   0x6   :  { %209 = vmatpush3.xpose.msk.msra.mxu0 %vm29_vm0, %v27_v2  ;;  %v21_v8 = vld [vmem:[%s358_s1 + $0x40] sm:$0xff]  ;;  %v20_v9 = vld [vmem:[%s358_s1 + $0x38] sm:$0xff]  ;;  %v19_v10 = vld [vmem:[%s358_s1 + $0x30] sm:$0xff]  ;;  %p251_p1 = scmp.lt.s32.totalorder %s165_s16, %s165_s16 }
   0x7   :  { %210 = vmatprep.subr.mxu0 %v268_v1  ;;  %v18_v11 = vld [vmem:[%s358_s1 + $0x28] sm:$0xff]  ;;  %v17_v12 = vld [vmem:[%s358_s1 + $0x20] sm:$0xff]  ;;  %v16_v13 = vld [vmem:[%s358_s1 + $0x18] sm:$0xff] }
   0x8   :  { %v15_v14 = vld [vmem:[%s358_s1 + $0x10] sm:$0xff]  ;;  %v14_v15 = vld [vmem:[%s358_s1 + $0x8] sm:$0xff]  ;;  %v13_v16 = vld [vmem:[%s358_s1] sm:$0xff]  ;;  %s246_s1 = scalar_lea.vmem %s165_s16, 128 }
   0x9   :  { %v12_v17 = vld [vmem:[%s357_s0] sm:$0xff]  ;;  %p247_p0 = scmp.ne.s32.totalorder %s165_s16, %s246_s1  ;;  %p252_p2 = scmp.lt.s32.totalorder %s246_s1, %s246_s1 }
   0xa   :  { %211 = vmatpush3.xpose.msk.msra.mxu0 %vm29_vm0, %v26_v3 }
   0xb   :  { %212 = vmatprep.subr.mxu0 %v268_v1  ;;  %p253_p3 = por %p252_p2, %p251_p1 }
   0xd   :  { %p254_p4 = pnand %p253_p3, %p247_p0 }
   0xe   :  { %213 = vmatpush3.xpose.msk.msra.mxu0 %vm29_vm0, %v25_v4 }
   0xf   :  { %214 = vmatprep.subr.mxu0 %v268_v1 }
  0x12   :  { %215 = vmatpush3.xpose.msk.msra.mxu0 %vm29_vm0, %v24_v5 }
  0x13   :  { %216 = vmatprep.subr.mxu0 %v268_v1 }
  0x16   :  { %217 = vmatpush3.xpose.msk.msra.mxu0 %vm29_vm0, %v23_v6 }
  0x17   :  { %218 = vmatprep.subr.mxu0 %v268_v1 }
  0x1a   :  { %219 = vmatpush3.xpose.msk.msra.mxu0 %vm29_vm0, %v22_v7 }
  0x1b   :  { %220 = vmatprep.subr.mxu0 %v268_v1 }
  0x1e   :  { %221 = vmatpush3.xpose.msk.msra.mxu0 %vm29_vm0, %v21_v8 }
  0x1f   :  { %222 = vmatprep.subr.mxu0 %v268_v1 }
  0x22   :  { %223 = vmatpush3.xpose.msk.msra.mxu0 %vm29_vm0, %v20_v9 }
  0x23   :  { %224 = vmatprep.subr.mxu0 %v268_v1 }
  0x26   :  { %225 = vmatpush3.xpose.msk.msra.mxu0 %vm29_vm0, %v19_v10 }
  0x27   :  { %226 = vmatprep.subr.mxu0 %v268_v1 }
  0x2a   :  { %227 = vmatpush3.xpose.msk.msra.mxu0 %vm29_vm0, %v18_v11 }
  0x2b   :  { %228 = vmatprep.subr.mxu0 %v268_v1 }
  0x2e   :  { %229 = vmatpush3.xpose.msk.msra.mxu0 %vm29_vm0, %v17_v12 }
  0x2f   :  { %230 = vmatprep.subr.mxu0 %v268_v1 }
  0x32   :  { %231 = vmatpush3.xpose.msk.msra.mxu0 %vm29_vm0, %v16_v13 }
  0x33   :  { %232 = vmatprep.subr.mxu0 %v268_v1 }
  0x36   :  { %233 = vmatpush3.xpose.msk.msra.mxu0 %vm29_vm0, %v15_v14 }
  0x37   :  { %234 = vmatprep.subr.mxu0 %v268_v1 }
  0x3a   :  { %235 = vmatpush3.xpose.msk.msra.mxu0 %vm29_vm0, %v14_v15 }
  0x3b   :  { %236 = vmatprep.subr.mxu0 %v268_v1 }
  0x3e   :  { %237 = vmatpush3.xpose.msk.msra.mxu0 %vm29_vm0, %v13_v16 }
  0x41   :  { %239 = vmatmul.mubr.msk.f32.vlgmr.msra.gmra.mxu0 %vm29_vm0, %v12_v17 }
 0x101   :  { %v147_v18 = vpop.f32.mrf.mxu0 }
 0x102   :  { %v151_v19 = vmul.f32 %v147_v18, %v147_v18 }
 0x103   :  { %v240_v20 = vpop.f32.mrf.mxu0 }
 0x104   :  { %152 = vadd.xlane.f32.xlu0 %v151_v19 }
 0x18d   :  { %v153_v21 = vpop.xlane.xlu0 %152 }
 0x18e   :  { %v154_v22 = vmax.f32 %v153_v21, 1e-24 }
 0x190   :  { %244 = vrsqrt.f32 %v154_v22 }
 0x19d   :  { %v245_v23 = vpop.eup %244 }
 0x19e   :  { %v156_v24 = vmul.f32 %v245_v23, %v147_v18 }
 0x1a0   :  { %157 = vst [vmem:[#allocation2] sm:$0xff] %v156_v24 }
 0x1a1   :  { %257 = shalt.err (!%p254_p4)
}
 0x1a2   :  { %167 = dma.vmem_to_hbm [thread:$0]  %s165_s16, 128, %s359_s2, [#allocation3]  }
 0x1a3   :  { %266 = dma.done.wait [#allocation3], 128  }
 0x1a4   :  { %267 = vsyncadd [#allocation3], 4294967168 }
 0x1a5   :  { %171 = vsyncpa [#allocation3], 1 }

</bundles_post_ra>
